<compile_context>
chip_gen: v7x
topology: tpu7x:2x2x1
jax: 0.10.0
libtpu: 0.0.40
codegen_flags: <defaults>
</compile_context>

<pallas_src>
import functools

import jax
import jax.numpy as jnp
from jax.experimental import pallas as pl
from jax.experimental.pallas import tpu as pltpu


def _label_smoothing_kernel(pred_ref, tgt_ref, per_row_ref, *, smoothing,
                            num_classes, n_rows, tile_n):
    confidence = 1.0 - smoothing
    off_value = smoothing / (num_classes - 1)

    x = pred_ref[...].astype(jnp.float32)                    # [TILE_N, C]

    # Stable log-softmax pieces (logp never materialized).
    m = jnp.max(x, axis=-1, keepdims=True)                   # [TILE_N, 1]
    z = x - m                                                 # [TILE_N, C]
    lse = jnp.log(jnp.sum(jnp.exp(z), axis=-1, keepdims=True))  # [TILE_N, 1]

    # Reductions reused by the algebraic form.
    sum_z = jnp.sum(z, axis=-1, keepdims=True)                # [TILE_N, 1]
    col = jax.lax.broadcasted_iota(jnp.int32, x.shape, 1)     # [TILE_N, C]
    tgt = tgt_ref[...]                                        # [TILE_N, 1] int32
    z_tgt = jnp.sum(jnp.where(col == tgt, z, 0.0),
                    axis=-1, keepdims=True)                   # [TILE_N, 1]

    # -sum_c(true_dist * logp) with sum_c(true_dist) == 1:
    #   = lse - off * sum_c(z) - (conf - off) * z[target]
    per_row = lse - off_value * sum_z - (confidence - off_value) * z_tgt

    # Mask rows past the true N (partial last tile reads unspecified padding).
    row = (pl.program_id(0) * tile_n
           + jax.lax.broadcasted_iota(jnp.int32, (tile_n, 1), 0))
    per_row = jnp.where(row < n_rows, per_row, 0.0)

    per_row_ref[...] = per_row.astype(per_row_ref.dtype)


def _pick_tile_n(n, c, itemsize, vmem_budget_bytes=8 * 1024 * 1024):
    # Size the double-buffered pred tile (2 * TILE_N * C * itemsize) to fit
    # comfortably in the scoped VMEM limit on every generation (incl. v7x).
    rows = vmem_budget_bytes // max(1, 2 * c * itemsize)
    rows = max(8, min(int(rows), 512))
    rows = (rows // 8) * 8                                    # sublane multiple
    n_pad = ((n + 7) // 8) * 8
    return max(8, min(rows, n_pad))


def label_smoothing_loss(pred, target, *, classes, smoothing=0.0, tile_n=None):
    """pred: [N, C] float (f32 or bf16), target: [N] int -> scalar f32 loss."""
    n, c = pred.shape
    assert c == classes

    itemsize = jnp.dtype(pred.dtype).itemsize
    if tile_n is None:
        tile_n = _pick_tile_n(n, c, itemsize)
    assert tile_n % 8 == 0

    num_tiles = int(pl.cdiv(n, tile_n))
    tgt2d = target.astype(jnp.int32).reshape(n, 1)

    kernel = functools.partial(
        _label_smoothing_kernel,
        smoothing=float(smoothing),
        num_classes=int(classes),
        n_rows=int(n),
        tile_n=int(tile_n),
    )

    # Scoped-VMEM: double-buffered pred tile + small target/output tiles.
    vmem_limit = 32 * 1024 * 1024

    per_row = pl.pallas_call(
        kernel,
        out_shape=jax.ShapeDtypeStruct((num_tiles * tile_n, 1), jnp.float32),
        grid_spec=pltpu.PrefetchScalarGridSpec(
            num_scalar_prefetch=0,
            grid=(num_tiles,),
            in_specs=[
                pl.BlockSpec((tile_n, c), lambda i: (i, 0)),   # pred row tile
                pl.BlockSpec((tile_n, 1), lambda i: (i, 0)),   # target row tile
            ],
            out_specs=pl.BlockSpec((tile_n, 1), lambda i: (i, 0)),
        ),
        compiler_params=pltpu.CompilerParams(
            dimension_semantics=("parallel",),   # shard row tiles across TCs
            vmem_limit_bytes=vmem_limit,
        ),
    )(pred, tgt2d)

    # Tiny finalize in plain JAX: padded rows were written as exact zeros.
    return jnp.sum(per_row) / n


def _reference(pred, target, classes, smoothing):
    # Pure-JAX reference mirroring the PyTorch module.
    logp = jax.nn.log_softmax(pred.astype(jnp.float32), axis=-1)
    confidence = 1.0 - smoothing
    true_dist = jnp.full_like(logp, smoothing / (classes - 1))
    true_dist = true_dist.at[jnp.arange(pred.shape[0]), target].set(confidence)
    return jnp.mean(jnp.sum(-true_dist * logp, axis=-1))


if __name__ == "__main__":
    key = jax.random.PRNGKey(0)
    k1, k2 = jax.random.split(key)

    # Small but representative: lane-aligned class dim, N not a multiple of the
    # row tile so the partial-tile masking path is exercised (grid = 3 tiles).
    N, C = 20, 128
    smoothing = 0.1

    pred = jax.random.normal(k1, (N, C), dtype=jnp.float32)
    target = jax.random.randint(k2, (N,), 0, C, dtype=jnp.int32)

    loss = label_smoothing_loss(pred, target, classes=C, smoothing=smoothing,
                                tile_n=8)
    loss = jax.block_until_ready(loss)

    ref = _reference(pred, target, C, smoothing)
    assert jnp.allclose(loss, ref, atol=1e-5, rtol=1e-5), (loss, ref)

    print("KERNEL_OK")
</pallas_src>

<mosaic_0001>
module attributes {stable_mosaic.version = 11 : i64} {
  func.func @_label_smoothing_kernel(%arg0: i32, %arg1: memref<8x128xf32, #tpu.memory_space<vmem>>, %arg2: memref<8x1xi32, #tpu.memory_space<vmem>>, %arg3: memref<8x1xf32, #tpu.memory_space<vmem>>) attributes {dimension_semantics = [#tpu.dimension_semantics<parallel>], iteration_bounds = array<i64: 3>, scalar_prefetch = 0 : i64, scratch_operands = 0 : i64, tpu.core_type = #tpu.core_type<tc>, window_params = [{transform_indices = @transform_0, window_bounds = array<i64: 8, 128>}, {transform_indices = @transform_1, window_bounds = array<i64: 8, 1>}, {transform_indices = @transform_2, window_bounds = array<i64: 8, 1>}]} {
    %c0 = arith.constant 0 : index
    %c0_0 = arith.constant 0 : index
    %0 = vector.load %arg1[%c0, %c0_0] : memref<8x128xf32, #tpu.memory_space<vmem>>, vector<8x128xf32>
    %cst = arith.constant dense<0xFF800000> : vector<8xf32>
    %1 = vector.multi_reduction <maximumf>, %0, %cst [1] : vector<8x128xf32> to vector<8xf32>
    %2 = vector.shape_cast %1 : vector<8xf32> to vector<8x1xf32>
    %3 = vector.broadcast %2 : vector<8x1xf32> to vector<8x128xf32>
    %4 = arith.subf %0, %3 : vector<8x128xf32>
    %5 = math.exp %4 : vector<8x128xf32>
    %cst_1 = arith.constant dense<0.000000e+00> : vector<8xf32>
    %6 = vector.multi_reduction <add>, %5, %cst_1 [1] : vector<8x128xf32> to vector<8xf32>
    %7 = vector.shape_cast %6 : vector<8xf32> to vector<8x1xf32>
    %8 = math.log %7 : vector<8x1xf32>
    %cst_2 = arith.constant dense<0.000000e+00> : vector<8xf32>
    %9 = vector.multi_reduction <add>, %4, %cst_2 [1] : vector<8x128xf32> to vector<8xf32>
    %10 = vector.shape_cast %9 : vector<8xf32> to vector<8x1xf32>
    %11 = tpu.iota {dimensions = array<i32: 1>} : vector<8x128xi32>
    %c0_3 = arith.constant 0 : index
    %c0_4 = arith.constant 0 : index
    %12 = vector.load %arg2[%c0_3, %c0_4] : memref<8x1xi32, #tpu.memory_space<vmem>>, vector<8x1xi32>
    %13 = vector.broadcast %12 : vector<8x1xi32> to vector<8x128xi32>
    %14 = arith.cmpi eq, %11, %13 : vector<8x128xi32>
    %cst_5 = arith.constant 0.000000e+00 : f32
    %15 = vector.broadcast %cst_5 : f32 to vector<8x128xf32>
    %16 = arith.select %14, %4, %15 : vector<8x128xi1>, vector<8x128xf32>
    %cst_6 = arith.constant dense<0.000000e+00> : vector<8xf32>
    %17 = vector.multi_reduction <add>, %16, %cst_6 [1] : vector<8x128xf32> to vector<8xf32>
    %18 = vector.shape_cast %17 : vector<8xf32> to vector<8x1xf32>
    %cst_7 = arith.constant 7.87401571E-4 : f32
    %19 = vector.broadcast %cst_7 : f32 to vector<8x1xf32>
    %20 = arith.mulf %19, %10 : vector<8x1xf32>
    %21 = arith.subf %8, %20 : vector<8x1xf32>
    %cst_8 = arith.constant 0.899212599 : f32
    %22 = vector.broadcast %cst_8 : f32 to vector<8x1xf32>
    %23 = arith.mulf %22, %18 : vector<8x1xf32>
    %24 = arith.subf %21, %23 : vector<8x1xf32>
    %c8_i32 = arith.constant 8 : i32
    %25 = arith.muli %arg0, %c8_i32 : i32
    %26 = tpu.iota {dimensions = array<i32: 0>} : vector<8x1xi32>
    %27 = vector.broadcast %25 : i32 to vector<8x1xi32>
    %28 = arith.addi %27, %26 : vector<8x1xi32>
    %c20_i32 = arith.constant 20 : i32
    %29 = vector.broadcast %c20_i32 : i32 to vector<8x1xi32>
    %30 = arith.cmpi slt, %28, %29 : vector<8x1xi32>
    %cst_9 = arith.constant 0.000000e+00 : f32
    %31 = vector.broadcast %cst_9 : f32 to vector<8x1xf32>
    %32 = arith.select %30, %24, %31 : vector<8x1xi1>, vector<8x1xf32>
    %c0_10 = arith.constant 0 : index
    %c0_11 = arith.constant 0 : index
    %33 = vector.load %arg3[%c0_10, %c0_11] : memref<8x1xf32, #tpu.memory_space<vmem>>, vector<8x1xf32>
    tpu.vector_store %arg3[%c0_10, %c0_11], %32 {strides = array<i32>} : memref<8x1xf32, #tpu.memory_space<vmem>>, vector<8x1xf32>,
    return
  }
  func.func @transform_0(%arg0: i32) -> (i32, i32) {
    %c0_i32 = arith.constant 0 : i32
    %c0_i32_0 = arith.constant 0 : i32
    return %arg0, %c0_i32 : i32, i32
  }
  func.func @transform_1(%arg0: i32) -> (i32, i32) {
    %c0_i32 = arith.constant 0 : i32
    %c0_i32_0 = arith.constant 0 : i32
    return %arg0, %c0_i32 : i32, i32
  }
  func.func @transform_2(%arg0: i32) -> (i32, i32) {
    %c0_i32 = arith.constant 0 : i32
    %c0_i32_0 = arith.constant 0 : i32
    return %arg0, %c0_i32 : i32, i32
  }
}

</mosaic_0001>

<bundles_post_ra>
// kernel: tpu_custom_call.1
= control target key start
LH: loop header
LB: loop body
LE: loop exit
PB: predicated region body
PF: predicated region fallthrough
CT: control target
= control target key end

     0   :  { %s305_s9 = smov 0   ;;  %s335_s0 = inlined_call_operand.vmem [shape: f32[20,128], index: 0, kind: input, shape index: {}]   ;;  %s336_s1 = inlined_call_operand.vmem [shape: s32[20,1], index: 1, kind: input, shape index: {}]   ;;  %s337_s2 = inlined_call_operand.vmem [shape: f32[24,1], index: 2, kind: output, shape index: {}]  }
   0x1 LB: > { %s311_s10 = sadd.s32 4294967295, %s287_s9   ;;  %p260_p0 = scmp.ge.s32.totalorder %s287_s9, 1  ;;  %s287_s9 = sphi %s305_s9, %s12_s9  }
   0x2   : > { %p120_p1 = scmp.lt.s32.totalorder %s287_s9, 4 }
   0x4   : > { %p121_p2 = pnand %p260_p0, %p120_p1 }
   0x5   : > { %p144_p3 = scmp.lt.s32.totalorder (!%p121_p2), %s311_s10, 2  ;;  %v289_v0 = vmov (!%p121_p2), 0   ;;  %v168_v6 = vlaneseq (!%p121_p2)  ;;  %s264_s19 = sshll.u32 (!%p121_p2), %s311_s10, 3  ;;  %vm189_vm2 = vcmask (!%p121_p2), 7168  }
   0x6   : > { %124 = sbr.rel (%p121_p2) target bundleno = 336 (0x150), region = 28  ;;  %276 = vset.pattern.permute.xlu0 (!%p121_p2), %v289_v0  ;;  %v185_v14 = vstv (!%p121_p2), %s264_s19 }
   0x7   : > { %v169_v8 = vand.u32 (!%p121_p2), 127, %v168_v6  ;;  %v184_v13 = vshrl.u32 (!%p121_p2), %v168_v6, 7 }
   0x9   : > { %v186_v16 = vadd.s32 (!%p121_p2), %v185_v14, %v184_v13 }
   0xb   : > { %vm187_vm1 = vcmp.lt.s32.totalorder (!%p121_p2), %v186_v16, 20 }
   0xd   : > { %s145_s11 = scalar_select %p144_p3, %s311_s10, 2 }
   0xf   : > { %s317_s12 = sshll.u32 %s145_s11, 3 }
  0x10   : > { %s147_s15 = scalar_lea.vmem %s335_s0, %s317_s12  ;;  %s151_s18 = scalar_lea.vmem %s336_s1, %s317_s12 }
  0x11   : > { %v156_v1 = vld [vmem:[%s147_s15] sm:$0xff]  ;;  %s155_s22 = scalar_lea.vmem %s337_s2, %s317_s12 }
  0x12   : > { %157 = vmax.xlane.f32.xlu0 %v156_v1  ;;  %v170_v2 = vld [vmem:[%s151_s18] sm:$0xff] }
  0x28   : > { %172 = vperm.xlu0 %276, %v170_v2  }
  0x9f   : > { %v158_v3 = vpop.xlane.xlu0 %157 }
  0xa0   : > { %v159_v4 = vsub.f32 %v156_v1, %v158_v3 }
  0xa2   : > { %v160_v5 = vmul.f32 1.442695, %v159_v4 }
  0xa4   : > { %277 = vpow2.f32 %v160_v5 }
  0xa7   : > { %v173_v9 = vpop.permute.xlu0 %172 }
  0xa8   : > { %vm174_vm0 = vcmp.eq.s32.totalorder %v169_v8, %v173_v9 }
  0xa9   : > { %v175_v10 = vsel %vm174_vm0, %v159_v4, 0.0 }
  0xae   : > { %v278_v7 = vpop.eup %277 }
  0xaf   : > { %162 = vadd.xlane.f32.xlu1 %v278_v7 }
  0xb3   : > { %166 = vadd.xlane.f32.xlu1 %v159_v4 }
  0xb7   : > { %176 = vadd.xlane.f32.xlu1 %v175_v10 }
 0x13c   : > { %v163_v11 = vpop.xlane.xlu1 %162 }
 0x13d   : > { %279 = vlog2.f32 %v163_v11 }
 0x140   : > { %v167_v12 = vpop.xlane.xlu1 %166 }
 0x141   : > { %v178_v19 = vmul.f32 0.0007874016, %v167_v12 }
 0x144   : > { %v177_v17 = vpop.xlane.xlu1 %176 }
 0x145   : > { %v180_v21 = vmul.f32 0.8992126, %v177_v17 }
 0x147   : > { %v280_v15 = vpop.eup %279 }
 0x148   : > { %v165_v18 = vmul.f32 0.6931472, %v280_v15 }
 0x14a   : > { %v179_v20 = vsub.f32 %v165_v18, %v178_v19 }
 0x14c   : > { %v181_v22 = vsub.f32 %v179_v20, %v180_v21 }
 0x14e   : > { %v188_v23 = vsel %vm187_vm1, %v181_v22, 0.0 }
 0x14f   : > { %190 = vst.msk [vmem:[%s155_s22] sm:$0xff] %vm189_vm2, %v188_v23 }
 0x150 PF: > { %s12_s9 = sadd.s32 1, %s287_s9  }
 0x151   : > { %p9_p4 = scmp.ge.s32.totalorder %s12_s9, 5  }
 0x153   :  { %11 = sbr.rel (!%p9_p4) target bundleno = 1 (0x1), region = 61 }

</bundles_post_ra>
